<compile_context>
chip_gen: v5e
topology: v5e:2x2
jax: 0.10.0
libtpu: 0.0.40
codegen_flags: <defaults>
</compile_context>

<pallas_src>
import jax
import jax.numpy as jnp
from jax.experimental import pallas as pl
from jax.experimental.pallas import tpu as pltpu

_LANE_C = 1024                   # lane-dense last dim (multiple of 128)
_MIN_PALLAS_ELEMS = 256 * 1024   # below this, fused XLA x*x wins (launch overhead)


def _round_up(a: int, b: int) -> int:
    return ((a + b - 1) // b) * b


def _square_kernel(x_ref, o_ref):
    x = x_ref[...]
    o_ref[...] = x * x


def _tile_params():
    """Return (target_block_bytes, vmem_limit_bytes) chosen per TPU generation."""
    vmem_cap = 128 * 1024 * 1024
    try:
        vmem_cap = int(pltpu.get_tpu_info().vmem_capacity_bytes)
    except Exception:
        pass  # fall back to conservative v5e/v6e-style tiling
    if vmem_cap <= 64 * 1024 * 1024:
        # v7x-class: small VMEM but very fast HBM -> big blocks, explicit headroom.
        # 2 bufs x (in + out) x 8 MiB = 32 MiB < 48 MiB limit < 64 MiB physical.
        return 8 * 1024 * 1024, 48 * 1024 * 1024
    # v5e / v6e (128 MiB VMEM): 4 MiB blocks (16 MiB double-buffered).  Setting
    # the limit explicitly keeps v5e (16 MiB scoped default) compiling cleanly.
    return 4 * 1024 * 1024, 32 * 1024 * 1024


def act_square(x: jax.Array, *, min_pallas_elems: int = _MIN_PALLAS_ELEMS) -> jax.Array:
    """torch.square(x) equivalent: elementwise x*x, any shape, dtype preserved."""
    total = x.size
    if total == 0:
        return x

    # Fast path: tiny tensors are dominated by pallas_call launch overhead.
    if total < max(min_pallas_elems, 2 * _LANE_C):
        return x * x

    itemsize = jnp.dtype(x.dtype).itemsize
    block_bytes, vmem_limit = _tile_params()
    compiler_params = pltpu.CompilerParams(
        dimension_semantics=("parallel",),
        vmem_limit_bytes=vmem_limit,
    )
    cost = pl.CostEstimate(
        flops=total,                          # one multiply per element
        transcendentals=0,
        bytes_accessed=2 * total * itemsize,  # read + write; HBM-bound
    )
    flat = x.reshape(-1)

    if total % _LANE_C == 0:
        # -------- lane-dense 2-D slab (reshape-only plumbing) ----------------
        rows = total // _LANE_C
        # Constant-byte blocks across dtypes; cap is a multiple of 32 rows.
        tm_cap = max(32, (block_bytes // (_LANE_C * itemsize)) // 32 * 32)
        # Sublane quantum so packed dtypes (bf16/int8) stay tile-aligned.
        q = max(8, 32 // itemsize)
        if rows <= 2 * q:
            tm = rows  # full-extent block (always legal); grid of 1 is fine here
        else:
            # >= 2 grid steps so both v7x TensorCores stream concurrently.
            tm = min(tm_cap, _round_up(pl.cdiv(rows, 2), q))
        grid = (pl.cdiv(rows, tm),)
        out = pl.pallas_call(
            _square_kernel,
            out_shape=jax.ShapeDtypeStruct((rows, _LANE_C), x.dtype),
            grid=grid,
            in_specs=[pl.BlockSpec((tm, _LANE_C), lambda i: (i, 0))],
            out_specs=pl.BlockSpec((tm, _LANE_C), lambda i: (i, 0)),
            compiler_params=compiler_params,
            cost_estimate=cost,
        )(flat.reshape(rows, _LANE_C))
        return out.reshape(x.shape)

    # -------- non-divisible sizes: 1-D kernel, Pallas edge masking ----------
    # No jnp.pad / slice copies: the partial last block reads garbage past the
    # end but only feeds masked OOB writes (safe for elementwise square).
    blk = max(_LANE_C, (block_bytes // itemsize) // _LANE_C * _LANE_C)
    nblk = pl.cdiv(total, blk)
    if nblk == 1:
        # Split so v7x's two TensorCores both get work (total >= 2*_LANE_C here,
        # so blk stays <= total and a multiple of 1024).
        blk = _round_up(pl.cdiv(total, 2), _LANE_C)
        nblk = pl.cdiv(total, blk)
    out = pl.pallas_call(
        _square_kernel,
        out_shape=jax.ShapeDtypeStruct((total,), x.dtype),
        grid=(nblk,),
        in_specs=[pl.BlockSpec((blk,), lambda i: (i,))],
        out_specs=pl.BlockSpec((blk,), lambda i: (i,)),
        compiler_params=compiler_params,
        cost_estimate=cost,
    )(flat)
    return out.reshape(x.shape)


if __name__ == "__main__":
    # Primary small input consistent with ShallowConvNet activations (NCHW).
    x = jax.random.normal(jax.random.PRNGKey(0), (2, 4, 16, 16), dtype=jnp.float32)

    # Force the Pallas path (2048 elems -> single 2x1024 lane-dense block).
    y = jax.block_until_ready(act_square(x, min_pallas_elems=0))
    assert y.shape == x.shape and y.dtype == x.dtype
    assert jnp.array_equal(y, x * x), "mismatch (small, forced pallas)"

    # Default call: tiny tensor takes the fused-XLA fast path.
    y_fast = jax.block_until_ready(act_square(x))
    assert jnp.array_equal(y_fast, x * x), "mismatch (fast path)"

    # 1024-divisible size at/above the threshold -> tiled 2-D path, multi-step grid.
    x2 = jax.random.normal(jax.random.PRNGKey(1), (2, 32, 64, 64), dtype=jnp.float32)
    y2 = jax.block_until_ready(act_square(x2))
    assert jnp.array_equal(y2, x2 * x2), "mismatch (2-D tiled path)"

    # Non-divisible size -> 1-D edge-masked path (no pad / slice copies).
    x3 = jax.random.normal(jax.random.PRNGKey(2), (3, 7, 33, 65), dtype=jnp.float32)
    y3 = jax.block_until_ready(act_square(x3, min_pallas_elems=0))
    assert jnp.array_equal(y3, x3 * x3), "mismatch (1-D edge-masked path)"

    # bf16 input exercises dtype-scaled (constant-byte) tiling.
    x4 = jax.random.normal(jax.random.PRNGKey(3), (4, 8, 32, 128), dtype=jnp.bfloat16)
    y4 = jax.block_until_ready(act_square(x4, min_pallas_elems=0))
    assert jnp.allclose(y4.astype(jnp.float32), (x4 * x4).astype(jnp.float32),
                        rtol=1e-2, atol=1e-6), "mismatch (bf16)"

    print("KERNEL_OK")
</pallas_src>

<mosaic_0001>
module attributes {stable_mosaic.version = 11 : i64} {
  func.func @_square_kernel(%arg0: i32, %arg1: memref<2x1024xf32, #tpu.memory_space<vmem>>, %arg2: memref<2x1024xf32, #tpu.memory_space<vmem>>) attributes {dimension_semantics = [#tpu.dimension_semantics<parallel>], iteration_bounds = array<i64: 1>, scalar_prefetch = 0 : i64, scratch_operands = 0 : i64, tpu.core_type = #tpu.core_type<tc>, window_params = [{transform_indices = @transform_0, window_bounds = array<i64: 2, 1024>}, {transform_indices = @transform_1, window_bounds = array<i64: 2, 1024>}]} {
    %c0 = arith.constant 0 : index
    %c0_0 = arith.constant 0 : index
    %0 = vector.load %arg1[%c0, %c0_0] : memref<2x1024xf32, #tpu.memory_space<vmem>>, vector<2x1024xf32>
    %1 = arith.mulf %0, %0 : vector<2x1024xf32>
    %c0_1 = arith.constant 0 : index
    %c0_2 = arith.constant 0 : index
    %2 = vector.load %arg2[%c0_1, %c0_2] : memref<2x1024xf32, #tpu.memory_space<vmem>>, vector<2x1024xf32>
    tpu.vector_store %arg2[%c0_1, %c0_2], %1 {strides = array<i32>} : memref<2x1024xf32, #tpu.memory_space<vmem>>, vector<2x1024xf32>,
    return
  }
  func.func @transform_0(%arg0: i32) -> (i32, i32) {
    %c0_i32 = arith.constant 0 : i32
    %c0_i32_0 = arith.constant 0 : i32
    return %arg0, %c0_i32 : i32, i32
  }
  func.func @transform_1(%arg0: i32) -> (i32, i32) {
    %c0_i32 = arith.constant 0 : i32
    %c0_i32_0 = arith.constant 0 : i32
    return %arg0, %c0_i32 : i32, i32
  }
}

</mosaic_0001>

<bundles_post_ra>
// kernel: tpu_custom_call.1
= control target key start
LH: loop header
LB: loop body
LE: loop exit
PB: predicated region body
PF: predicated region fallthrough
CT: control target
= control target key end

     0   :  { %6 = vsyncpa [#allocation3], 0  ;;  %s118_s0 = inlined_call_operand.hbm [shape: f32[2,1024], index: 0, kind: input, shape index: {}]   ;;  %s119_s1 = inlined_call_operand.hbm [shape: f32[2,1024], index: 1, kind: output, shape index: {}]  }
   0x1   :  { %7 = vsyncpa [#allocation4], 0  ;;  %s13_s8 = sshll.u32 %s118_s0, 4  ;;  %s100_s9 = smov [#allocation2]   ;;  %s14_s8 = int_to_ptr.hbm [resolvable:$true] %s13_s8 }
   0x2   :  { %s15_s10 = sshll.u32 %s100_s9, 4  ;;  %s16_s10 = int_to_ptr.vmem [resolvable:$true] %s15_s10 }
   0x3   :  { %18 = dma.hbm_to_vmem [thread:$0]  %s14_s8, 256, %s16_s10, [#allocation3]  }
   0x4   :  { %96 = dma.done.wait [#allocation3], 256  }
   0x5   :  { %97 = vsyncadd [#allocation3], 4294967040  ;;  %s101_s11 = smov [#allocation5]   ;;  %s36_s15 = sshll.u32 %s119_s1, 4  ;;  %v23_v0 = vld [vmem:[#allocation2] sm:$0xff]  ;;  %v24_v1 = vld [vmem:[#allocation2 + $0x8] sm:$0xff]  ;;  %s37_s15 = int_to_ptr.hbm [resolvable:$true] %s36_s15 }
   0x6   :  { %s34_s12 = sshll.u32 %s101_s11, 4  ;;  %v25_v2 = vmul.f32 %v23_v0, %v23_v0  ;;  %v26_v3 = vmul.f32 %v24_v1, %v24_v1  ;;  %s35_s12 = int_to_ptr.vmem [resolvable:$true] %s34_s12 }
   0x8   :  { %27 = vst [vmem:[#allocation5] sm:$0xff] %v25_v2 }
   0x9   :  { %28 = vst [vmem:[#allocation5 + $0x8] sm:$0xff] %v26_v3 }
   0xa   :  { %39 = dma.vmem_to_hbm [thread:$0]  %s35_s12, 256, %s37_s15, [#allocation4]  }
   0xb   :  { %98 = dma.done.wait [#allocation4], 256  }
   0xc   :  { %99 = vsyncadd [#allocation4], 4294967040 }
   0xd   :  { %44 = vsyncpa [#allocation3], 1 }
   0xe   :  { %45 = vsyncpa [#allocation4], 1 }

</bundles_post_ra>
